<compile_context>
chip_gen: v7x
topology: tpu7x:2x2x1
jax: 0.10.0
libtpu: 0.0.40
codegen_flags: <defaults>
</compile_context>

<pallas_src>
import math

import jax
import jax.numpy as jnp
from jax import lax
from jax.experimental import pallas as pl
from jax.experimental.pallas import tpu as pltpu

# Large finite negative for masked scores; exp(mask - m) underflows to exactly 0.
DEFAULT_MASK_VALUE = -0.7 * float(jnp.finfo(jnp.float32).max)


def _make_mha_kernel(num_heads: int, head_dim: int, d_out: int, compute_dtype):
    def cast(a):
        return a if compute_dtype is None else a.astype(compute_dtype)

    def mha_kernel(x_ref, wqkv_ref, wo_ref, bo_ref, o_ref):
        bb, T, d_in = x_ref.shape

        # --- fused QKV projection over all bb*T rows (single MXU matmul) ---
        x2 = x_ref[...].reshape(bb * T, d_in)                      # leading-dim merge (free)
        qkv = jnp.dot(cast(x2), cast(wqkv_ref[...]),
                      preferred_element_type=jnp.float32)          # (bb*T, 3*d_out) f32
        qkv = qkv.reshape(bb, T, 3 * d_out)                        # leading-dim split (free)

        # causal mask: True above the diagonal (positions to mask out)
        row = lax.broadcasted_iota(jnp.int32, (T, T), 0)
        col = lax.broadcasted_iota(jnp.int32, (T, T), 1)
        causal = (col > row)[None, :, :]                           # (1, T, T)

        wo = wo_ref[...]                                           # (d_out, d_out)
        out_acc = jnp.zeros((bb * T, d_out), jnp.float32)

        for h in range(num_heads):                                 # static unroll over heads
            lo = h * head_dim
            # 1/sqrt(head_dim) scale is already folded into the Q weights.
            qh = qkv[:, :, lo:lo + head_dim]                       # (bb, T, hd)
            kh = qkv[:, :, d_out + lo:d_out + lo + head_dim]       # (bb, T, hd)
            vh = qkv[:, :, 2 * d_out + lo:2 * d_out + lo + head_dim]

            # scores: batched matmul contracting last dims (no explicit k^T)
            s = jnp.einsum("btd,bsd->bts", cast(qh), cast(kh),
                           preferred_element_type=jnp.float32)     # (bb, T, T)
            s = jnp.where(causal, DEFAULT_MASK_VALUE, s)

            # numerically stable softmax with deferred normalization
            m = jnp.max(s, axis=-1, keepdims=True)
            e = jnp.exp(s - m)                                     # (bb, T, T)
            denom = jnp.sum(e, axis=-1, keepdims=True)             # (bb, T, 1)

            ctx = jnp.einsum("bts,bsd->btd", cast(e), cast(vh),
                             preferred_element_type=jnp.float32)   # (bb, T, hd)
            ctx = ctx / denom                                      # normalize (T, hd), not (T, T)

            # accumulate the output projection per head (fuses concat + out_proj)
            out_acc = out_acc + jnp.dot(
                cast(ctx.reshape(bb * T, head_dim)),
                cast(wo[lo:lo + head_dim, :]),
                preferred_element_type=jnp.float32)                # (bb*T, d_out)

        out = out_acc + bo_ref[...]                                # (bb*T, d_out) + (1, d_out)
        o_ref[...] = out.reshape(bb, T, d_out).astype(o_ref.dtype)

    return mha_kernel


def multi_head_attention(x, wq_t, wk_t, wv_t, wo_t, bo, *, num_heads,
                         batch_block=None, compute_dtype=None):
    """x: (B, T, d_in); w*_t: weights already transposed to (d_in|d_out, d_out); bo: (d_out,).

    compute_dtype: optional MXU-operand dtype (e.g. jnp.bfloat16); accumulation stays f32.
    batch_block: batch elements processed per grid step (default: whole batch).
    """
    B, T, d_in = x.shape
    d_out = wq_t.shape[1]
    assert d_out % num_heads == 0, "d_out must be divisible by num_heads"
    head_dim = d_out // num_heads

    if batch_block is None:
        batch_block = B
    assert B % batch_block == 0
    num_blocks = B // batch_block

    # Fold the softmax scale into Wq and fuse Q|K|V into one weight slab.
    scale = 1.0 / math.sqrt(head_dim)
    wqkv = jnp.concatenate([wq_t * scale, wk_t, wv_t], axis=1)     # (d_in, 3*d_out)
    bo2 = bo.reshape(1, d_out)

    kernel = _make_mha_kernel(num_heads, head_dim, d_out, compute_dtype)

    return pl.pallas_call(
        kernel,
        out_shape=jax.ShapeDtypeStruct((B, T, d_out), x.dtype),
        grid_spec=pltpu.PrefetchScalarGridSpec(
            num_scalar_prefetch=0,
            grid=(num_blocks,),
            in_specs=[
                pl.BlockSpec((batch_block, T, d_in), lambda i: (i, 0, 0)),  # x
                pl.BlockSpec((d_in, 3 * d_out), lambda i: (0, 0)),          # [Wq*scale | Wk | Wv]^T
                pl.BlockSpec((d_out, d_out), lambda i: (0, 0)),             # Wo^T
                pl.BlockSpec((1, d_out), lambda i: (0, 0)),                 # out_proj bias
            ],
            out_specs=pl.BlockSpec((batch_block, T, d_out), lambda i: (i, 0, 0)),
        ),
        compiler_params=pltpu.CompilerParams(
            dimension_semantics=("parallel",),
        ),
    )(x, wqkv, wo_t, bo2)


def reference_mha(x, wq_t, wk_t, wv_t, wo_t, bo, *, num_heads):
    """Pure-JAX reference mirroring the PyTorch forward (eval mode)."""
    B, T, d_in = x.shape
    d_out = wq_t.shape[1]
    hd = d_out // num_heads

    q = x @ wq_t
    k = x @ wk_t
    v = x @ wv_t
    q = q.reshape(B, T, num_heads, hd).transpose(0, 2, 1, 3)
    k = k.reshape(B, T, num_heads, hd).transpose(0, 2, 1, 3)
    v = v.reshape(B, T, num_heads, hd).transpose(0, 2, 1, 3)
    s = jnp.einsum("bhqd,bhkd->bhqk", q, k)
    mask = jnp.triu(jnp.ones((T, T), dtype=bool), k=1)
    s = jnp.where(mask[None, None], -jnp.inf, s)
    w = jax.nn.softmax(s / math.sqrt(hd), axis=-1)
    ctx = jnp.einsum("bhqk,bhkd->bhqd", w, v)
    ctx = ctx.transpose(0, 2, 1, 3).reshape(B, T, d_out)
    return ctx @ wo_t + bo


if __name__ == "__main__":
    # Module hyper-params (small, consistent with the PyTorch module)
    B, T = 2, 8
    d_in, d_out = 32, 32
    num_heads = 4

    key = jax.random.PRNGKey(0)
    k_x, k_q, k_k, k_v, k_o, k_b = jax.random.split(key, 6)

    x = jax.random.normal(k_x, (B, T, d_in), dtype=jnp.float32)

    # PyTorch nn.Linear weights are (d_out, d_in); build and pre-transpose them.
    Wq = jax.random.normal(k_q, (d_out, d_in), dtype=jnp.float32) * 0.1
    Wk = jax.random.normal(k_k, (d_out, d_in), dtype=jnp.float32) * 0.1
    Wv = jax.random.normal(k_v, (d_out, d_in), dtype=jnp.float32) * 0.1
    Wo = jax.random.normal(k_o, (d_out, d_out), dtype=jnp.float32) * 0.1
    bo = jax.random.normal(k_b, (d_out,), dtype=jnp.float32) * 0.1

    out = multi_head_attention(
        x, Wq.T, Wk.T, Wv.T, Wo.T, bo, num_heads=num_heads
    )
    out = jax.block_until_ready(out)

    ref = reference_mha(x, Wq.T, Wk.T, Wv.T, Wo.T, bo, num_heads=num_heads)
    assert out.shape == (B, T, d_out)
    assert jnp.allclose(out, ref, atol=1e-4, rtol=1e-4), "mismatch vs reference"

    print("KERNEL_OK")
</pallas_src>

<mosaic_0001>
module attributes {stable_mosaic.version = 11 : i64} {
  func.func @mha_kernel(%arg0: i32, %arg1: memref<2x8x32xf32, #tpu.memory_space<vmem>>, %arg2: memref<32x96xf32, #tpu.memory_space<vmem>>, %arg3: memref<32x32xf32, #tpu.memory_space<vmem>>, %arg4: memref<1x32xf32, #tpu.memory_space<vmem>>, %arg5: memref<2x8x32xf32, #tpu.memory_space<vmem>>) attributes {dimension_semantics = [#tpu.dimension_semantics<parallel>], iteration_bounds = array<i64: 1>, scalar_prefetch = 0 : i64, scratch_operands = 0 : i64, tpu.core_type = #tpu.core_type<tc>, window_params = [{transform_indices = @transform_0, window_bounds = array<i64: 2, 8, 32>}, {pipeline_mode = #tpu.pipeline_mode<synchronous>, transform_indices = @transform_1, window_bounds = array<i64: 32, 96>}, {pipeline_mode = #tpu.pipeline_mode<synchronous>, transform_indices = @transform_2, window_bounds = array<i64: 32, 32>}, {pipeline_mode = #tpu.pipeline_mode<synchronous>, transform_indices = @transform_3, window_bounds = array<i64: 1, 32>}, {transform_indices = @transform_4, window_bounds = array<i64: 2, 8, 32>}]} {
    %c0 = arith.constant 0 : index
    %c0_0 = arith.constant 0 : index
    %c0_1 = arith.constant 0 : index
    %0 = vector.load %arg1[%c0, %c0_0, %c0_1] : memref<2x8x32xf32, #tpu.memory_space<vmem>>, vector<2x8x32xf32>
    %1 = vector.shape_cast %0 : vector<2x8x32xf32> to vector<16x32xf32>
    %c0_2 = arith.constant 0 : index
    %c0_3 = arith.constant 0 : index
    %2 = vector.load %arg2[%c0_2, %c0_3] : memref<32x96xf32, #tpu.memory_space<vmem>>, vector<32x96xf32>
    %cst = arith.constant dense<0.000000e+00> : vector<16x96xf32>
    %3 = tpu.matmul %1, %2, %cst {dimension_numbers = #tpu.dot_dimension_numbers<[1], [0], [0], [1], [0, 0, 1, 1], [], []>} : vector<16x32xf32>, vector<32x96xf32>, vector<16x96xf32> -> vector<16x96xf32>
    %4 = vector.shape_cast %3 : vector<16x96xf32> to vector<2x8x96xf32>
    %5 = tpu.iota {dimensions = array<i32: 0>} : vector<8x8xi32>
    %6 = tpu.iota {dimensions = array<i32: 1>} : vector<8x8xi32>
    %7 = arith.cmpi sgt, %6, %5 : vector<8x8xi32>
    %8 = vector.shape_cast %7 : vector<8x8xi1> to vector<1x8x8xi1>
    %c0_4 = arith.constant 0 : index
    %c0_5 = arith.constant 0 : index
    %9 = vector.load %arg3[%c0_4, %c0_5] : memref<32x32xf32, #tpu.memory_space<vmem>>, vector<32x32xf32>
    %cst_6 = arith.constant 0.000000e+00 : f32
    %10 = vector.broadcast %cst_6 : f32 to vector<16x32xf32>
    %11 = vector.extract_strided_slice %4 {offsets = [0, 0, 0], sizes = [2, 8, 8], strides = [1, 1, 1]} : vector<2x8x96xf32> to vector<2x8x8xf32>
    %12 = vector.extract_strided_slice %4 {offsets = [0, 0, 32], sizes = [2, 8, 8], strides = [1, 1, 1]} : vector<2x8x96xf32> to vector<2x8x8xf32>
    %13 = vector.extract_strided_slice %4 {offsets = [0, 0, 64], sizes = [2, 8, 8], strides = [1, 1, 1]} : vector<2x8x96xf32> to vector<2x8x8xf32>
    "tpu.trace_start"() <{level = 10 : i32, message = "btd,bsd->bts"}> : () -> ()
    %cst_7 = arith.constant dense<0.000000e+00> : vector<2x8x8xf32>
    %14 = tpu.matmul %11, %12, %cst_7 {dimension_numbers = #tpu.dot_dimension_numbers<[2], [2], [1], [1], [0, 0, 0, 1, 1, 1], [0], [0]>} : vector<2x8x8xf32>, vector<2x8x8xf32>, vector<2x8x8xf32> -> vector<2x8x8xf32>
    %cst_8 = arith.constant -2.38197633E+38 : f32
    "tpu.trace_stop"() : () -> ()
    %15 = vector.shape_cast %8 : vector<1x8x8xi1> to vector<1x8x8xi1>
    %16 = vector.broadcast %15 : vector<1x8x8xi1> to vector<2x8x8xi1>
    %17 = vector.broadcast %cst_8 : f32 to vector<2x8x8xf32>
    %18 = arith.select %16, %17, %14 : vector<2x8x8xi1>, vector<2x8x8xf32>
    %cst_9 = arith.constant dense<0xFF800000> : vector<2x8xf32>
    %19 = vector.multi_reduction <maximumf>, %18, %cst_9 [2] : vector<2x8x8xf32> to vector<2x8xf32>
    %20 = vector.shape_cast %19 : vector<2x8xf32> to vector<2x8x1xf32>
    %21 = vector.broadcast %20 : vector<2x8x1xf32> to vector<2x8x8xf32>
    %22 = arith.subf %18, %21 : vector<2x8x8xf32>
    %23 = math.exp %22 : vector<2x8x8xf32>
    %cst_10 = arith.constant dense<0.000000e+00> : vector<2x8xf32>
    %24 = vector.multi_reduction <add>, %23, %cst_10 [2] : vector<2x8x8xf32> to vector<2x8xf32>
    %25 = vector.shape_cast %24 : vector<2x8xf32> to vector<2x8x1xf32>
    "tpu.trace_start"() <{level = 10 : i32, message = "bts,bsd->btd"}> : () -> ()
    %cst_11 = arith.constant dense<0.000000e+00> : vector<2x8x8xf32>
    %26 = tpu.matmul %23, %13, %cst_11 {dimension_numbers = #tpu.dot_dimension_numbers<[2], [1], [1], [2], [0, 0, 0, 1, 1, 2], [0], [0]>} : vector<2x8x8xf32>, vector<2x8x8xf32>, vector<2x8x8xf32> -> vector<2x8x8xf32>
    "tpu.trace_stop"() : () -> ()
    %27 = vector.broadcast %25 : vector<2x8x1xf32> to vector<2x8x8xf32>
    %28 = arith.divf %26, %27 : vector<2x8x8xf32>
    %29 = vector.shape_cast %28 : vector<2x8x8xf32> to vector<16x8xf32>
    %30 = vector.extract_strided_slice %9 {offsets = [0, 0], sizes = [8, 32], strides = [1, 1]} : vector<32x32xf32> to vector<8x32xf32>
    %cst_12 = arith.constant dense<0.000000e+00> : vector<16x32xf32>
    %31 = tpu.matmul %29, %30, %cst_12 {dimension_numbers = #tpu.dot_dimension_numbers<[1], [0], [0], [1], [0, 0, 1, 1], [], []>} : vector<16x8xf32>, vector<8x32xf32>, vector<16x32xf32> -> vector<16x32xf32>
    %32 = arith.addf %10, %31 : vector<16x32xf32>
    %33 = vector.extract_strided_slice %4 {offsets = [0, 0, 8], sizes = [2, 8, 8], strides = [1, 1, 1]} : vector<2x8x96xf32> to vector<2x8x8xf32>
    %34 = vector.extract_strided_slice %4 {offsets = [0, 0, 40], sizes = [2, 8, 8], strides = [1, 1, 1]} : vector<2x8x96xf32> to vector<2x8x8xf32>
    %35 = vector.extract_strided_slice %4 {offsets = [0, 0, 72], sizes = [2, 8, 8], strides = [1, 1, 1]} : vector<2x8x96xf32> to vector<2x8x8xf32>
    "tpu.trace_start"() <{level = 10 : i32, message = "btd,bsd->bts"}> : () -> ()
    %cst_13 = arith.constant dense<0.000000e+00> : vector<2x8x8xf32>
    %36 = tpu.matmul %33, %34, %cst_13 {dimension_numbers = #tpu.dot_dimension_numbers<[2], [2], [1], [1], [0, 0, 0, 1, 1, 1], [0], [0]>} : vector<2x8x8xf32>, vector<2x8x8xf32>, vector<2x8x8xf32> -> vector<2x8x8xf32>
    %cst_14 = arith.constant -2.38197633E+38 : f32
    "tpu.trace_stop"() : () -> ()
    %37 = vector.shape_cast %8 : vector<1x8x8xi1> to vector<1x8x8xi1>
    %38 = vector.broadcast %37 : vector<1x8x8xi1> to vector<2x8x8xi1>
    %39 = vector.broadcast %cst_14 : f32 to vector<2x8x8xf32>
    %40 = arith.select %38, %39, %36 : vector<2x8x8xi1>, vector<2x8x8xf32>
    %cst_15 = arith.constant dense<0xFF800000> : vector<2x8xf32>
    %41 = vector.multi_reduction <maximumf>, %40, %cst_15 [2] : vector<2x8x8xf32> to vector<2x8xf32>
    %42 = vector.shape_cast %41 : vector<2x8xf32> to vector<2x8x1xf32>
    %43 = vector.broadcast %42 : vector<2x8x1xf32> to vector<2x8x8xf32>
    %44 = arith.subf %40, %43 : vector<2x8x8xf32>
    %45 = math.exp %44 : vector<2x8x8xf32>
    %cst_16 = arith.constant dense<0.000000e+00> : vector<2x8xf32>
    %46 = vector.multi_reduction <add>, %45, %cst_16 [2] : vector<2x8x8xf32> to vector<2x8xf32>
    %47 = vector.shape_cast %46 : vector<2x8xf32> to vector<2x8x1xf32>
    "tpu.trace_start"() <{level = 10 : i32, message = "bts,bsd->btd"}> : () -> ()
    %cst_17 = arith.constant dense<0.000000e+00> : vector<2x8x8xf32>
    %48 = tpu.matmul %45, %35, %cst_17 {dimension_numbers = #tpu.dot_dimension_numbers<[2], [1], [1], [2], [0, 0, 0, 1, 1, 2], [0], [0]>} : vector<2x8x8xf32>, vector<2x8x8xf32>, vector<2x8x8xf32> -> vector<2x8x8xf32>
    "tpu.trace_stop"() : () -> ()
    %49 = vector.broadcast %47 : vector<2x8x1xf32> to vector<2x8x8xf32>
    %50 = arith.divf %48, %49 : vector<2x8x8xf32>
    %51 = vector.shape_cast %50 : vector<2x8x8xf32> to vector<16x8xf32>
    %52 = vector.extract_strided_slice %9 {offsets = [8, 0], sizes = [8, 32], strides = [1, 1]} : vector<32x32xf32> to vector<8x32xf32>
    %cst_18 = arith.constant dense<0.000000e+00> : vector<16x32xf32>
    %53 = tpu.matmul %51, %52, %cst_18 {dimension_numbers = #tpu.dot_dimension_numbers<[1], [0], [0], [1], [0, 0, 1, 1], [], []>} : vector<16x8xf32>, vector<8x32xf32>, vector<16x32xf32> -> vector<16x32xf32>
    %54 = arith.addf %32, %53 : vector<16x32xf32>
    %55 = vector.extract_strided_slice %4 {offsets = [0, 0, 16], sizes = [2, 8, 8], strides = [1, 1, 1]} : vector<2x8x96xf32> to vector<2x8x8xf32>
    %56 = vector.extract_strided_slice %4 {offsets = [0, 0, 48], sizes = [2, 8, 8], strides = [1, 1, 1]} : vector<2x8x96xf32> to vector<2x8x8xf32>
    %57 = vector.extract_strided_slice %4 {offsets = [0, 0, 80], sizes = [2, 8, 8], strides = [1, 1, 1]} : vector<2x8x96xf32> to vector<2x8x8xf32>
    "tpu.trace_start"() <{level = 10 : i32, message = "btd,bsd->bts"}> : () -> ()
    %cst_19 = arith.constant dense<0.000000e+00> : vector<2x8x8xf32>
    %58 = tpu.matmul %55, %56, %cst_19 {dimension_numbers = #tpu.dot_dimension_numbers<[2], [2], [1], [1], [0, 0, 0, 1, 1, 1], [0], [0]>} : vector<2x8x8xf32>, vector<2x8x8xf32>, vector<2x8x8xf32> -> vector<2x8x8xf32>
    %cst_20 = arith.constant -2.38197633E+38 : f32
    "tpu.trace_stop"() : () -> ()
    %59 = vector.shape_cast %8 : vector<1x8x8xi1> to vector<1x8x8xi1>
    %60 = vector.broadcast %59 : vector<1x8x8xi1> to vector<2x8x8xi1>
    %61 = vector.broadcast %cst_20 : f32 to vector<2x8x8xf32>
    %62 = arith.select %60, %61, %58 : vector<2x8x8xi1>, vector<2x8x8xf32>
    %cst_21 = arith.constant dense<0xFF800000> : vector<2x8xf32>
    %63 = vector.multi_reduction <maximumf>, %62, %cst_21 [2] : vector<2x8x8xf32> to vector<2x8xf32>
    %64 = vector.shape_cast %63 : vector<2x8xf32> to vector<2x8x1xf32>
    %65 = vector.broadcast %64 : vector<2x8x1xf32> to vector<2x8x8xf32>
    %66 = arith.subf %62, %65 : vector<2x8x8xf32>
    %67 = math.exp %66 : vector<2x8x8xf32>
    %cst_22 = arith.constant dense<0.000000e+00> : vector<2x8xf32>
    %68 = vector.multi_reduction <add>, %67, %cst_22 [2] : vector<2x8x8xf32> to vector<2x8xf32>
    %69 = vector.shape_cast %68 : vector<2x8xf32> to vector<2x8x1xf32>
    "tpu.trace_start"() <{level = 10 : i32, message = "bts,bsd->btd"}> : () -> ()
    %cst_23 = arith.constant dense<0.000000e+00> : vector<2x8x8xf32>
    %70 = tpu.matmul %67, %57, %cst_23 {dimension_numbers = #tpu.dot_dimension_numbers<[2], [1], [1], [2], [0, 0, 0, 1, 1, 2], [0], [0]>} : vector<2x8x8xf32>, vector<2x8x8xf32>, vector<2x8x8xf32> -> vector<2x8x8xf32>
    "tpu.trace_stop"() : () -> ()
    %71 = vector.broadcast %69 : vector<2x8x1xf32> to vector<2x8x8xf32>
    %72 = arith.divf %70, %71 : vector<2x8x8xf32>
    %73 = vector.shape_cast %72 : vector<2x8x8xf32> to vector<16x8xf32>
    %74 = vector.extract_strided_slice %9 {offsets = [16, 0], sizes = [8, 32], strides = [1, 1]} : vector<32x32xf32> to vector<8x32xf32>
    %cst_24 = arith.constant dense<0.000000e+00> : vector<16x32xf32>
    %75 = tpu.matmul %73, %74, %cst_24 {dimension_numbers = #tpu.dot_dimension_numbers<[1], [0], [0], [1], [0, 0, 1, 1], [], []>} : vector<16x8xf32>, vector<8x32xf32>, vector<16x32xf32> -> vector<16x32xf32>
    %76 = arith.addf %54, %75 : vector<16x32xf32>
    %77 = vector.extract_strided_slice %4 {offsets = [0, 0, 24], sizes = [2, 8, 8], strides = [1, 1, 1]} : vector<2x8x96xf32> to vector<2x8x8xf32>
    %78 = vector.extract_strided_slice %4 {offsets = [0, 0, 56], sizes = [2, 8, 8], strides = [1, 1, 1]} : vector<2x8x96xf32> to vector<2x8x8xf32>
    %79 = vector.extract_strided_slice %4 {offsets = [0, 0, 88], sizes = [2, 8, 8], strides = [1, 1, 1]} : vector<2x8x96xf32> to vector<2x8x8xf32>
    "tpu.trace_start"() <{level = 10 : i32, message = "btd,bsd->bts"}> : () -> ()
    %cst_25 = arith.constant dense<0.000000e+00> : vector<2x8x8xf32>
    %80 = tpu.matmul %77, %78, %cst_25 {dimension_numbers = #tpu.dot_dimension_numbers<[2], [2], [1], [1], [0, 0, 0, 1, 1, 1], [0], [0]>} : vector<2x8x8xf32>, vector<2x8x8xf32>, vector<2x8x8xf32> -> vector<2x8x8xf32>
    %cst_26 = arith.constant -2.38197633E+38 : f32
    "tpu.trace_stop"() : () -> ()
    %81 = vector.shape_cast %8 : vector<1x8x8xi1> to vector<1x8x8xi1>
    %82 = vector.broadcast %81 : vector<1x8x8xi1> to vector<2x8x8xi1>
    %83 = vector.broadcast %cst_26 : f32 to vector<2x8x8xf32>
    %84 = arith.select %82, %83, %80 : vector<2x8x8xi1>, vector<2x8x8xf32>
    %cst_27 = arith.constant dense<0xFF800000> : vector<2x8xf32>
    %85 = vector.multi_reduction <maximumf>, %84, %cst_27 [2] : vector<2x8x8xf32> to vector<2x8xf32>
    %86 = vector.shape_cast %85 : vector<2x8xf32> to vector<2x8x1xf32>
    %87 = vector.broadcast %86 : vector<2x8x1xf32> to vector<2x8x8xf32>
    %88 = arith.subf %84, %87 : vector<2x8x8xf32>
    %89 = math.exp %88 : vector<2x8x8xf32>
    %cst_28 = arith.constant dense<0.000000e+00> : vector<2x8xf32>
    %90 = vector.multi_reduction <add>, %89, %cst_28 [2] : vector<2x8x8xf32> to vector<2x8xf32>
    %91 = vector.shape_cast %90 : vector<2x8xf32> to vector<2x8x1xf32>
    "tpu.trace_start"() <{level = 10 : i32, message = "bts,bsd->btd"}> : () -> ()
    %cst_29 = arith.constant dense<0.000000e+00> : vector<2x8x8xf32>
    %92 = tpu.matmul %89, %79, %cst_29 {dimension_numbers = #tpu.dot_dimension_numbers<[2], [1], [1], [2], [0, 0, 0, 1, 1, 2], [0], [0]>} : vector<2x8x8xf32>, vector<2x8x8xf32>, vector<2x8x8xf32> -> vector<2x8x8xf32>
    "tpu.trace_stop"() : () -> ()
    %93 = vector.broadcast %91 : vector<2x8x1xf32> to vector<2x8x8xf32>
    %94 = arith.divf %92, %93 : vector<2x8x8xf32>
    %95 = vector.shape_cast %94 : vector<2x8x8xf32> to vector<16x8xf32>
    %96 = vector.extract_strided_slice %9 {offsets = [24, 0], sizes = [8, 32], strides = [1, 1]} : vector<32x32xf32> to vector<8x32xf32>
    %cst_30 = arith.constant dense<0.000000e+00> : vector<16x32xf32>
    %97 = tpu.matmul %95, %96, %cst_30 {dimension_numbers = #tpu.dot_dimension_numbers<[1], [0], [0], [1], [0, 0, 1, 1], [], []>} : vector<16x8xf32>, vector<8x32xf32>, vector<16x32xf32> -> vector<16x32xf32>
    %98 = arith.addf %76, %97 : vector<16x32xf32>
    %c0_31 = arith.constant 0 : index
    %c0_32 = arith.constant 0 : index
    %99 = vector.load %arg4[%c0_31, %c0_32] : memref<1x32xf32, #tpu.memory_space<vmem>>, vector<1x32xf32>
    %100 = vector.broadcast %99 : vector<1x32xf32> to vector<16x32xf32>
    %101 = arith.addf %98, %100 : vector<16x32xf32>
    %102 = vector.shape_cast %101 : vector<16x32xf32> to vector<2x8x32xf32>
    %c0_33 = arith.constant 0 : index
    %c0_34 = arith.constant 0 : index
    %c0_35 = arith.constant 0 : index
    %103 = vector.load %arg5[%c0_33, %c0_34, %c0_35] : memref<2x8x32xf32, #tpu.memory_space<vmem>>, vector<2x8x32xf32>
    tpu.vector_store %arg5[%c0_33, %c0_34, %c0_35], %102 {strides = array<i32>} : memref<2x8x32xf32, #tpu.memory_space<vmem>>, vector<2x8x32xf32>,
    return
  }
  func.func @transform_0(%arg0: i32) -> (i32, i32, i32) {
    %c0_i32 = arith.constant 0 : i32
    %c0_i32_0 = arith.constant 0 : i32
    %c0_i32_1 = arith.constant 0 : i32
    return %arg0, %c0_i32, %c0_i32_0 : i32, i32, i32
  }
  func.func @transform_1(%arg0: i32) -> (i32, i32) {
    %c0_i32 = arith.constant 0 : i32
    %c0_i32_0 = arith.constant 0 : i32
    %c0_i32_1 = arith.constant 0 : i32
    return %c0_i32, %c0_i32_0 : i32, i32
  }
  func.func @transform_2(%arg0: i32) -> (i32, i32) {
    %c0_i32 = arith.constant 0 : i32
    %c0_i32_0 = arith.constant 0 : i32
    %c0_i32_1 = arith.constant 0 : i32
    return %c0_i32, %c0_i32_0 : i32, i32
  }
  func.func @transform_3(%arg0: i32) -> (i32, i32) {
    %c0_i32 = arith.constant 0 : i32
    %c0_i32_0 = arith.constant 0 : i32
    %c0_i32_1 = arith.constant 0 : i32
    return %c0_i32, %c0_i32_0 : i32, i32
  }
  func.func @transform_4(%arg0: i32) -> (i32, i32, i32) {
    %c0_i32 = arith.constant 0 : i32
    %c0_i32_0 = arith.constant 0 : i32
    %c0_i32_1 = arith.constant 0 : i32
    return %arg0, %c0_i32, %c0_i32_0 : i32, i32, i32
  }
}

</mosaic_0001>

<bundles_post_ra>
// kernel: tpu_custom_call.1
= control target key start
LH: loop header
LB: loop body
LE: loop exit
PB: predicated region body
PF: predicated region fallthrough
CT: control target
= control target key end

     0   :  { %9 = vsyncpa [#allocation3], 0  ;;  %s2471_s0 = inlined_call_operand.hbm [shape: f32[2,8,32], index: 0, kind: input, shape index: {}]   ;;  %s2472_s1 = inlined_call_operand.hbm [shape: f32[32,96], index: 1, kind: input, shape index: {}]   ;;  %s2473_s2 = inlined_call_operand.hbm [shape: f32[32,32], index: 2, kind: input, shape index: {}]   ;;  %s2474_s3 = inlined_call_operand.vmem [shape: f32[1,32], index: 3, kind: input, shape index: {}]   ;;  %s2475_s4 = inlined_call_operand.hbm [shape: f32[2,8,32], index: 4, kind: output, shape index: {}]  }
   0x1   :  { %10 = vsyncpa [#allocation6], 0 }
   0x2   :  { %11 = vsyncpa [#allocation4], 0  ;;  %s2197_s15 = smov [#allocation5]   ;;  %s2198_s17 = smov [#allocation2]  }
   0x3   :  { %s29_s16 = sshll.u32 %s2197_s15, 4  ;;  %s17_s18 = sshll.u32 %s2198_s17, 4  ;;  %s30_s16 = int_to_ptr.vmem [resolvable:$true] %s29_s16  ;;  %s2241_s18 = int_to_ptr.vmem [resolvable:$true] %s17_s18 }
   0x4   :  { %s2103_s21 = scalar_lea.hbm %s2472_s1, 512 }
   0x5   :  { %p2104_p0 = scmp.ne.s32.totalorder %s2472_s1, %s2103_s21  ;;  %p2107_p1 = scmp.lt.u32.totalorder %s2103_s21, %s2472_s1 }
   0x7   :  { %p2109_p2 = pnand %p2107_p1, %p2104_p0 }
   0x9   :  { %2112 = shalt.err (!%p2109_p2)
}
   0xa   :  { %s2113_s26 = scalar_lea.vmem %s30_s16, 512  ;;  %p2118_p4 = scmp.lt.s32.totalorder %s30_s16, %s30_s16 }
   0xb   :  { %p2114_p3 = scmp.ne.s32.totalorder %s30_s16, %s2113_s26  ;;  %p2119_p5 = scmp.lt.s32.totalorder %s2113_s26, %s2113_s26 }
   0xd   :  { %p2120_p6 = por %p2119_p5, %p2118_p4 }
   0xf   :  { %p2121_p7 = pnand %p2120_p6, %p2114_p3 }
  0x11   :  { %2124 = shalt.err (!%p2121_p7)
}
  0x12   :  { %s2199_s27 = smov 128   ;;  %s2200_s28 = smov 8  }
  0x13   :  { %35 = dma.hbm_to_vmem [thread:$0]  %s2472_s1, 512, %s30_s16, [#allocation6], %s2199_s27, %s2199_s27, %s2200_s28  }
  0x14   :  { %s2125_s7 = scalar_lea.hbm %s2471_s0, 256 }
  0x15   :  { %p2126_p8 = scmp.ne.s32.totalorder %s2471_s0, %s2125_s7  ;;  %p2129_p9 = scmp.lt.u32.totalorder %s2125_s7, %s2471_s0 }
  0x17   :  { %p2131_p10 = pnand %p2129_p9, %p2126_p8 }
  0x19   :  { %2134 = shalt.err (!%p2131_p10)
}
  0x1a   :  { %s2135_s12 = scalar_lea.vmem %s2241_s18, 256  ;;  %p2140_p12 = scmp.lt.s32.totalorder %s2241_s18, %s2241_s18 }
  0x1b   :  { %p2136_p11 = scmp.ne.s32.totalorder %s2241_s18, %s2135_s12  ;;  %p2141_p13 = scmp.lt.s32.totalorder %s2135_s12, %s2135_s12 }
  0x1d   :  { %p2142_p0 = por %p2141_p13, %p2140_p12 }
  0x1f   :  { %p2143_p1 = pnand %p2142_p0, %p2136_p11 }
  0x21   :  { %2146 = shalt.err (!%p2143_p1)
}
  0x22   :  { %23 = dma.hbm_to_vmem [thread:$0]  %s2471_s0, 256, %s2241_s18, [#allocation3], %s2199_s27, %s2199_s27, %s2200_s28  }
  0x23   :  { %s2201_s14 = smov [#allocation7]   ;;  %s2147_s19 = scalar_lea.hbm %s2473_s2, 512 }
  0x24   :  { %s41_s15 = sshll.u32 %s2201_s14, 4  ;;  %p2148_p2 = scmp.ne.s32.totalorder %s2473_s2, %s2147_s19  ;;  %s42_s15 = int_to_ptr.vmem [resolvable:$true] %s41_s15 }
  0x25   :  { %p2151_p3 = scmp.lt.u32.totalorder %s2147_s19, %s2473_s2 }
  0x27   :  { %p2153_p4 = pnand %p2151_p3, %p2148_p2 }
  0x29   :  { %2156 = shalt.err (!%p2153_p4)
}
  0x2a   :  { %s2157_s24 = scalar_lea.vmem %s42_s15, 512  ;;  %p2162_p6 = scmp.lt.s32.totalorder %s42_s15, %s42_s15 }
  0x2b   :  { %p2158_p5 = scmp.ne.s32.totalorder %s42_s15, %s2157_s24  ;;  %p2163_p7 = scmp.lt.s32.totalorder %s2157_s24, %s2157_s24 }
  0x2d   :  { %p2164_p8 = por %p2163_p7, %p2162_p6 }
  0x2f   :  { %p2165_p9 = pnand %p2164_p8, %p2158_p5 }
  0x31   :  { %2168 = shalt.err (!%p2165_p9)
}
  0x32   :  { %47 = dma.hbm_to_vmem [thread:$0]  %s2473_s2, 512, %s42_s15, [#allocation6], %s2199_s27, %s2199_s27, %s2200_s28  }
  0x33   :  { %2191 = dma.done.wait [#allocation3], 256  }
  0x34   :  { %2192 = vsyncadd [#allocation3], 4294967040 }
  0x35   :  { %2193 = dma.done.wait [#allocation6], 1024  }
  0x36   :  { %2194 = vsyncadd [#allocation6], 4294966272  ;;  %vm65_vm0 = vcmask 261120   ;;  %v61_v0 = vld [vmem:[#allocation5] sm:$0xff]  ;;  %v62_v1 = vld [vmem:[#allocation5 + $0x8] sm:$0xff]  ;;  %v2202_v8 = vmov 0.0   ;;  %v147_v18 = vlaneseq }
  0x37   :  { %v63_v2 = vld [vmem:[#allocation5 + $0x10] sm:$0xff]  ;;  %v2038_v3 = vpack.c.bf16 %v62_v1, %v61_v0  ;;  %v64_v4 = vld [vmem:[#allocation5 + $0x18] sm:$0xff]  ;;  %1938 = vmatprep.subr.mxu1 %v2202_v8  ;;  %vm2203_vm1 = vmmov 0   ;;  %s2204_s2 = smov 96   ;;  %s2205_s25 = smov 64   ;;  %vm159_vm2 = vcmask 64512  }
  0x38   :  { %v59_v5 = vld [vmem:[#allocation2] sm:$0xff]  ;;  %v2042_v6 = vpack.c.bf16 %v64_v4, %v63_v2  ;;  %v60_v7 = vld [vmem:[#allocation2 + $0x8] sm:$0xff]  ;;  %1940 = vmatprep.mubr.msk.f32.mxu1 %vm2203_vm1, %v2202_v8  ;;  %s2206_s26 = smov 88   ;;  %s2207_s29 = smov 120   ;;  %v148_v19 = vshrl.u32 %v147_v18, 7  ;;  %v150_v20 = vand.u32 127, %v147_v18 }
  0x39   :  { %1935 = vmatprep.mubr.msk.f32.mxu0 %vm65_vm0, %v59_v5  ;;  %2039 = vmatprep.subr.bf16.mxu0 %v2038_v3  ;;  %s2208_s30 = smov 56   ;;  %s2209_s5 = smov 80  }
  0x3a   :  { %2041 = vmatpush3.bf16.msra.mxu0 %v2038_v3  ;;  %s2210_s6 = smov 112   ;;  %vm2337_vm3 = vcmp.gt.s32.totalorder %v150_v20, %v148_v19  ;;  %s2211_s7 = smov 48  }
  0x3b   :  { %2043 = vmatprep.subr.bf16.mxu0 %v2042_v6  ;;  %s2212_s8 = smov 72   ;;  %s2213_s9 = smov 104  }
  0x3c   :  { %s2214_s10 = smov 40   ;;  %s2215_s1 = smov [#allocation8]  }
  0x3d   :  { %s1829_s13 = sshll.u32 %s2215_s1, 4  ;;  %s1830_s13 = int_to_ptr.vmem [resolvable:$true] %s1829_s13 }
  0x3e   :  { %2045 = vmatpush3.bf16.msra.mxu0 %v2042_v6  ;;  %s2169_s14 = scalar_lea.vmem %s1830_s13, 256  ;;  %p2174_p11 = scmp.lt.s32.totalorder %s1830_s13, %s1830_s13 }
  0x3f   :  { %1958 = vmatprep.subr.mxu0 %v2202_v8  ;;  %p2170_p10 = scmp.ne.s32.totalorder %s1830_s13, %s2169_s14  ;;  %p2175_p12 = scmp.lt.s32.totalorder %s2169_s14, %s2169_s14 }
  0x41   :  { %1936 = vmatmul.mubr.msk.f32.vlgmr.msra.gmra.mrb[0].mxu0 %vm65_vm0, %v60_v7  ;;  %v153_v7 = vld [vmem:[#allocation7 + $0x8] sm:$0xff]  ;;  %p2176_p13 = por %p2175_p12, %p2174_p11 }
  0x42   :  { %1960 = vmatprep.mubr.msk.f32.mxu0 %vm2203_vm1, %v2202_v8 }
  0x43   :  { %p2177_p0 = pnand %p2176_p13, %p2170_p10 }
 0x114   :  { %v2301_v9 = vpop.f32.mrb[0].mxu0 }
 0x115   :  { %v2303_v10 = vpop.f32.mrb[1].mxu0 }
 0x116   :  { %157 = vrot.lane.b32.xlu0 %v2303_v10, %s2204_s2 }
 0x11a   :  { %235 = vrot.lane.b32.xlu0 %v2301_v9, %s2204_s2 }
 0x11e   :  { %333 = vrot.lane.b32.xlu0 %v2303_v10, %s2205_s25 }
 0x122   :  { %569 = vrot.lane.b32.xlu0 %v2301_v9, %s2206_s26 }
 0x126   :  { %567 = vrot.lane.b32.xlu0 %v2301_v9, %s2207_s29 }
 0x12a   :  { %491 = vrot.lane.b32.xlu0 %v2303_v10, %s2206_s26 }
 0x12e   :  { %489 = vrot.lane.b32.xlu0 %v2303_v10, %s2207_s29 }
 0x132   :  { %741 = vrot.lane.b32.xlu0 %v2301_v9, %s2208_s30 }
 0x136   :  { %985 = vrot.lane.b32.xlu0 %v2303_v10, %s2209_s5 }
 0x13a   :  { %983 = vrot.lane.b32.xlu0 %v2303_v10, %s2210_s6 }
 0x13e   :  { %1063 = vrot.lane.b32.xlu0 %v2301_v9, %s2209_s5 }
 0x142   :  { %1061 = vrot.lane.b32.xlu0 %v2301_v9, %s2210_s6 }
 0x188   :  { %v158_v11 = vpop.permute.xlu0 %157 }
 0x189   :  { %1939 = vmatpush3.xpose.msk.msra.mxu1 %vm159_vm2, %v158_v11  ;;  %v152_v11 = vld [vmem:[#allocation7] sm:$0xff] }
 0x18a   :  { %1943 = vmatprep.subr.mxu1 %v2202_v8 }
 0x18c   :  { %1941 = vmatmul.mubr.msk.f32.vlgmr.msra.gmra.mrb[0].mxu1 %vm159_vm2, %v2303_v10  ;;  %v236_v12 = vpop.permute.xlu0 %235 }
 0x18d   :  { %1944 = vmatpush3.xpose.msk.msra.mxu1 %vm159_vm2, %v236_v12  ;;  %1945 = vmatprep.mubr.msk.f32.mxu1 %vm2203_vm1, %v2202_v8 }
 0x18e   :  { %1948 = vmatprep.subr.mxu1 %v2202_v8 }
 0x190   :  { %1946 = vmatmul.mubr.msk.f32.vlgmr.msra.gmra.mrb[2].mxu1 %vm159_vm2, %v2301_v9  ;;  %v334_v13 = vpop.permute.xlu0 %333 }
 0x191   :  { %1949 = vmatpush3.msra.mxu1 %v334_v13  ;;  %1950 = vmatprep.mubr.msk.f32.mxu1 %vm2203_vm1, %v2202_v8 }
 0x192   :  { %1953 = vmatprep.subr.mxu1 %v2202_v8 }
 0x194   :  { %v570_v14 = vpop.permute.xlu0 %569 }
 0x198   :  { %v568_v15 = vpop.permute.xlu0 %567 }
 0x19c   :  { %v492_v16 = vpop.permute.xlu0 %491 }
 0x19d   :  { %1959 = vmatpush3.xpose.msk.msra.mxu0 %vm159_vm2, %v492_v16 }
 0x19e   :  { %1968 = vmatprep.subr.mxu0 %v2202_v8 }
 0x1a0   :  { %v490_v17 = vpop.permute.xlu0 %489 }
 0x1a1   :  { %1961 = vmatmul.mubr.msk.f32.vlgmr.msra.gmra.mrb[2].mxu0 %vm159_vm2, %v490_v17 }
 0x1a2   :  { %1970 = vmatprep.mubr.msk.f32.mxu0 %vm2203_vm1, %v2202_v8 }
 0x1a4   :  { %v742_v45 = vpop.permute.xlu0 %741 }
 0x1a8   :  { %v986_v54 = vpop.permute.xlu0 %985 }
 0x1ac   :  { %v984_v55 = vpop.permute.xlu0 %983 }
 0x1b0   :  { %v1064_v56 = vpop.permute.xlu0 %1063 }
 0x1b4   :  { %v1062_v57 = vpop.permute.xlu0 %1061 }
 0x25f   :  { %v230_v22 = vpop.f32.mrb[0].mxu1 }
 0x260   :  { %v313_v23 = vsel %vm2337_vm3, -2.3819763e+38, %v230_v22  ;;  %v1942_v24 = vpop.f32.mrb[1].mxu1 }
 0x261   :  { %v315_v25 = vsel %vm159_vm2, %v313_v23, -inf }
 0x262   :  { %316 = vmax.xlane.f32.xlu1 %v315_v25 }
 0x263   :  { %v307_v26 = vpop.f32.mrb[2].mxu1 }
 0x264   :  { %v314_v27 = vsel %vm2337_vm3, -2.3819763e+38, %v307_v26  ;;  %v1947_v28 = vpop.f32.mrb[3].mxu1 }
 0x265   :  { %v318_v29 = vsel %vm159_vm2, %v314_v27, -inf }
 0x266   :  { %319 = vmax.xlane.f32.xlu1 %v318_v29 }
 0x274   :  { %v563_v30 = vpop.f32.mrb[2].mxu0 }
 0x275   :  { %v645_v31 = vsel %vm2337_vm3, -2.3819763e+38, %v563_v30  ;;  %v1962_v32 = vpop.f32.mrb[3].mxu0 }
 0x276   :  { %v647_v33 = vsel %vm159_vm2, %v645_v31, -inf }
 0x277   :  { %409 = vrot.lane.b32.xlu1 %v2301_v9, %s2205_s25  ;;  %648 = vmax.xlane.f32.xlu0 %v647_v33 }
 0x2ef   :  { %v317_v34 = vpop.xlane.xlu1 %316 }
 0x2f0   :  { %v321_v35 = vsub.f32 %v313_v23, %v317_v34 }
 0x2f2   :  { %v323_v36 = vmul.f32 1.442695, %v321_v35 }
 0x2f3   :  { %v320_v37 = vpop.xlane.xlu1 %319 }
 0x2f4   :  { %2071 = vpow2.f32 %v323_v36  ;;  %v322_v38 = vsub.f32 %v314_v27, %v320_v37 }
 0x2f6   :  { %v325_v39 = vmul.f32 1.442695, %v322_v38 }
 0x2f7   :  { %v410_v41 = vpop.permute.xlu1 %409 }
 0x2f8   :  { %2073 = vpow2.f32 %v325_v39 }
 0x2fe   :  { %v2072_v40 = vpop.eup %2071 }
 0x2ff   :  { %1951 = vmatmul.mubr.msk.f32.vlgmr.msra.gmra.mrb[4].mxu1 %vm159_vm2, %v2072_v40  ;;  %v327_v42 = vsel %vm159_vm2, %v2072_v40, 0.0 }
 0x300   :  { %1954 = vmatpush3.msra.mxu1 %v410_v41  ;;  %328 = vadd.xlane.f32.xlu0 %v327_v42 }
 0x301   :  { %1955 = vmatprep.mubr.msk.f32.mxu1 %vm2203_vm1, %v2202_v8  ;;  %1963 = vmatprep.subr.mxu1 %v2202_v8 }
 0x302   :  { %v2074_v43 = vpop.eup %2073 }
 0x303   :  { %1956 = vmatmul.mubr.msk.f32.vlgmr.msra.gmra.mrb[6].mxu1 %vm159_vm2, %v2074_v43  ;;  %v330_v44 = vsel %vm159_vm2, %v2074_v43, 0.0 }
 0x304   :  { %331 = vadd.xlane.f32.xlu0 %v330_v44  ;;  %1965 = vmatprep.mubr.msk.f32.mxu1 %vm2203_vm1, %v2202_v8  ;;  %v649_v58 = vpop.xlane.xlu0 %648 }
 0x305   :  { %v653_v59 = vsub.f32 %v645_v31, %v649_v58 }
 0x307   :  { %1964 = vmatpush3.xpose.msk.msra.mxu1 %vm159_vm2, %v570_v14  ;;  %v655_v60 = vmul.f32 1.442695, %v653_v59 }
 0x308   :  { %1973 = vmatprep.subr.mxu1 %v2202_v8 }
 0x309   :  { %2075 = vpow2.f32 %v655_v60 }
 0x30a   :  { %1966 = vmatmul.mubr.msk.f32.vlgmr.msra.gmra.mrb[8].mxu1 %vm159_vm2, %v568_v15 }
 0x30b   :  { %1974 = vmatpush3.msra.mxu1 %v742_v45  ;;  %1975 = vmatprep.mubr.msk.f32.mxu1 %vm2203_vm1, %v2202_v8 }
 0x30c   :  { %1988 = vmatprep.subr.mxu1 %v2202_v8 }
 0x313   :  { %v2076_v61 = vpop.eup %2075 }
 0x314   :  { %v659_v62 = vsel %vm159_vm2, %v2076_v61, 0.0 }
 0x38d   :  { %v329_v12 = vpop.xlane.xlu0 %328 }
 0x391   :  { %v332_v13 = vpop.xlane.xlu0 %331 }
 0x3d2   :  { %v2367_v46 = vpop.f32.mrb[4].mxu1 }
 0x3d3   :  { %v1952_v47 = vpop.f32.mrb[5].mxu1 }
 0x3d6   :  { %v2369_v48 = vpop.f32.mrb[6].mxu1 }
 0x3d7   :  { %v1957_v49 = vpop.f32.mrb[7].mxu1 }
 0x3dd   :  { %v641_v50 = vpop.f32.mrb[8].mxu1 }
 0x3de   :  { %v646_v51 = vsel %vm2337_vm3, -2.3819763e+38, %v641_v50  ;;  %v1967_v52 = vpop.f32.mrb[9].mxu1 }
 0x3df   :  { %v650_v53 = vsel %vm159_vm2, %v646_v51, -inf }
 0x3e0   :  { %651 = vmax.xlane.f32.xlu1 %v650_v53 }
 0x3f1   :  { %665 = vrot.lane.b32.xlu1 %v2303_v10, %s2208_s30 }
 0x415   :  { %660 = vadd.xlane.f32.xlu1 %v659_v62 }
 0x426   :  { %1235 = vrot.lane.b32.xlu1 %v2301_v9, %s2211_s7 }
 0x46d   :  { %v652_v63 = vpop.xlane.xlu1 %651 }
 0x46e   :  { %v654_v0 = vsub.f32 %v646_v51, %v652_v63 }
 0x470   :  { %v657_v1 = vmul.f32 1.442695, %v654_v0 }
 0x471   :  { %v666_v2 = vpop.permute.xlu1 %665 }
 0x472   :  { %2077 = vpow2.f32 %v657_v1  ;;  %1969 = vmatpush3.msra.mxu0 %v666_v2 }
 0x473   :  { %1971 = vmatmul.mubr.msk.f32.vlgmr.msra.gmra.mrb[4].mxu0 %vm159_vm2, %v2076_v61  ;;  %1978 = vmatprep.subr.mxu0 %v153_v7 }
 0x474   :  { %1979 = vmatpush3.msra.mxu0 %v153_v7 }
 0x475   :  { %1983 = vmatprep.subr.mxu0 %v152_v11 }
 0x47c   :  { %v2078_v3 = vpop.eup %2077 }
 0x47d   :  { %1976 = vmatmul.mubr.msk.f32.vlgmr.msra.gmra.mrb[10].mxu1 %vm159_vm2, %v2078_v3  ;;  %v662_v4 = vsel %vm159_vm2, %v2078_v3, 0.0 }
 0x47e   :  { %1989 = vmatpush3.xpose.msk.msra.mxu1 %vm159_vm2, %v986_v54  ;;  %663 = vadd.xlane.f32.xlu0 %v662_v4 }
 0x47f   :  { %1990 = vmatprep.mubr.msk.f32.mxu1 %vm2203_vm1, %v2202_v8  ;;  %1993 = vmatprep.subr.mxu1 %v2202_v8 }
 0x481   :  { %1991 = vmatmul.mubr.msk.f32.vlgmr.msra.gmra.mrb[12].mxu1 %vm159_vm2, %v984_v55 }
 0x482   :  { %1994 = vmatpush3.xpose.msk.msra.mxu1 %vm159_vm2, %v1064_v56  ;;  %1995 = vmatprep.mubr.msk.f32.mxu1 %vm2203_vm1, %v2202_v8 }
 0x483   :  { %2003 = vmatprep.subr.mxu1 %v2202_v8 }
 0x485   :  { %1996 = vmatmul.mubr.msk.f32.vlgmr.msra.gmra.mrb[14].mxu1 %vm159_vm2, %v1062_v57 }
 0x486   :  { %2005 = vmatprep.mubr.msk.f32.mxu1 %vm2203_vm1, %v2202_v8 }
 0x4a2   :  { %v661_v5 = vpop.xlane.xlu1 %660 }
 0x4a3   :  { %2079 = vrcp.f32 %v661_v5 }
 0x4a6   :  { %v1236_v6 = vpop.permute.xlu1 %1235 }
 0x4a7   :  { %2004 = vmatpush3.msra.mxu1 %v1236_v6 }
 0x4a8   :  { %2013 = vmatprep.subr.mxu1 %v2202_v8 }
 0x4ad   :  { %v2080_v15 = vpop.eup %2079 }
 0x50b   :  { %v664_v14 = vpop.xlane.xlu0 %663 }
 0x50c   :  { %2081 = vrcp.f32 %v664_v14 }
 0x50d   :  { %2083 = vrcp.f32 %v329_v12 }
 0x50e   :  { %2085 = vrcp.f32 %v332_v13 }
 0x516   :  { %v2082_v19 = vpop.eup %2081 }
 0x517   :  { %v2084_v22 = vpop.eup %2083 }
 0x518   :  { %v486_v25 = vmul.f32 %v2084_v22, %v2367_v46  ;;  %v2086_v30 = vpop.eup %2085 }
 0x519   :  { %v488_v32 = vmul.f32 %v2086_v30, %v2369_v48  ;;  %v154_v48 = vld [vmem:[#allocation7 + $0x10] sm:$0xff] }
 0x546   :  { %v737_v16 = vpop.f32.mrb[4].mxu0 }
 0x547   :  { %v818_v17 = vmul.f32 %v2080_v15, %v737_v16  ;;  %v1972_v18 = vpop.f32.mrb[5].mxu0 }
 0x549   :  { %1980 = vmatprep.mubr.msk.f32.mxu0 %vm159_vm2, %v818_v17  ;;  %v155_v17 = vld [vmem:[#allocation7 + $0x18] sm:$0xff] }
 0x550   :  { %v813_v20 = vpop.f32.mrb[10].mxu1 }
 0x551   :  { %v820_v23 = vmul.f32 %v2082_v19, %v813_v20  ;;  %v1977_v24 = vpop.f32.mrb[11].mxu1 }
 0x553   :  { %1981 = vmatmul.mubr.msk.f32.vlgmr.msra.gmra.mrb[6].mxu0 %vm159_vm2, %v820_v23 }
 0x554   :  { %1985 = vmatprep.mubr.msk.f32.mxu0 %vm159_vm2, %v486_v25  ;;  %v1057_v26 = vpop.f32.mrb[12].mxu1  ;;  %1984 = vmatpush3.msra.mxu0 %v152_v11 }
 0x555   :  { %v1139_v27 = vsel %vm2337_vm3, -2.3819763e+38, %v1057_v26  ;;  %v1992_v28 = vpop.f32.mrb[13].mxu1  ;;  %1998 = vmatprep.subr.mxu0 %v2202_v8 }
 0x556   :  { %v1141_v29 = vsel %vm159_vm2, %v1139_v27, -inf }
 0x557   :  { %1142 = vmax.xlane.f32.xlu0 %v1141_v29  ;;  %v1876_v29 = vld [vmem:[%s2474_s3] ss:$0 sm:$0xff] }
 0x558   :  { %v1135_v31 = vpop.f32.mrb[14].mxu1 }
 0x559   :  { %v1140_v33 = vsel %vm2337_vm3, -2.3819763e+38, %v1135_v31  ;;  %v1997_v34 = vpop.f32.mrb[15].mxu1 }
 0x55a   :  { %v1144_v35 = vsel %vm159_vm2, %v1140_v33, -inf }
 0x55b   :  { %1145 = vmax.xlane.f32.xlu0 %v1144_v35  ;;  %1986 = vmatmul.mubr.msk.f32.vlgmr.msra.gmra.mrb[6].mxu0 %vm159_vm2, %v488_v32 }
 0x55c   :  { %2000 = vmatprep.mubr.msk.f32.mxu0 %vm2203_vm1, %v2202_v8 }
 0x571   :  { %1159 = vrot.lane.b32.xlu0 %v2303_v10, %s2211_s7 }
 0x575   :  { %1400 = vrot.lane.b32.xlu0 %v2303_v10, %s2212_s8 }
 0x5e4   :  { %v1143_v36 = vpop.xlane.xlu0 %1142 }
 0x5e5   :  { %v1147_v37 = vsub.f32 %v1139_v27, %v1143_v36 }
 0x5e7   :  { %v1149_v38 = vmul.f32 1.442695, %v1147_v37 }
 0x5e8   :  { %v1146_v39 = vpop.xlane.xlu0 %1145 }
 0x5e9   :  { %2087 = vpow2.f32 %v1149_v38  ;;  %v1148_v40 = vsub.f32 %v1140_v33, %v1146_v39 }
 0x5eb   :  { %v1151_v41 = vmul.f32 1.442695, %v1148_v40 }
 0x5ec   :  { %v1160_v42 = vpop.permute.xlu0 %1159 }
 0x5ed   :  { %2089 = vpow2.f32 %v1151_v41  ;;  %1999 = vmatpush3.msra.mxu0 %v1160_v42 }
 0x5ee   :  { %2008 = vmatprep.subr.mxu0 %v154_v48 }
 0x5f0   :  { %v1401_v46 = vpop.permute.xlu0 %1400 }
 0x5f3   :  { %v2088_v43 = vpop.eup %2087 }
 0x5f4   :  { %2001 = vmatmul.mubr.msk.f32.vlgmr.msra.gmra.mrb[8].mxu0 %vm159_vm2, %v2088_v43  ;;  %v1153_v44 = vsel %vm159_vm2, %v2088_v43, 0.0 }
 0x5f5   :  { %1154 = vadd.xlane.f32.xlu0 %v1153_v44  ;;  %2009 = vmatpush3.msra.mxu0 %v154_v48 }
 0x5f6   :  { %2018 = vmatprep.subr.mxu0 %v2202_v8 }
 0x5f7   :  { %v2090_v45 = vpop.eup %2089 }
 0x5f8   :  { %2006 = vmatmul.mubr.msk.f32.vlgmr.msra.gmra.mrb[16].mxu1 %vm159_vm2, %v2090_v45  ;;  %v1156_v47 = vsel %vm159_vm2, %v2090_v45, 0.0 }
 0x5f9   :  { %2014 = vmatpush3.xpose.msk.msra.mxu1 %vm159_vm2, %v1401_v46  ;;  %1157 = vadd.xlane.f32.xlu1 %v1156_v47 }
 0x5fa   :  { %2015 = vmatprep.mubr.msk.f32.mxu1 %vm2203_vm1, %v2202_v8  ;;  %2023 = vmatprep.subr.mxu1 %v2202_v8 }
 0x60a   :  { %1478 = vrot.lane.b32.xlu1 %v2301_v9, %s2212_s8 }
 0x60b   :  { %1398 = vrot.lane.b32.xlu0 %v2303_v10, %s2213_s9 }
 0x60f   :  { %1476 = vrot.lane.b32.xlu0 %v2301_v9, %s2213_s9 }
 0x682   :  { %v1155_v49 = vpop.xlane.xlu0 %1154 }
 0x683   :  { %2091 = vrcp.f32 %v1155_v49 }
 0x686   :  { %v1399_v50 = vpop.permute.xlu0 %1398  ;;  %v1158_v51 = vpop.xlane.xlu1 %1157 }
 0x687   :  { %2016 = vmatmul.mubr.msk.f32.vlgmr.msra.gmra.mrb[18].mxu1 %vm159_vm2, %v1399_v50  ;;  %2093 = vrcp.f32 %v1158_v51 }
 0x688   :  { %2025 = vmatprep.mubr.msk.f32.mxu1 %vm2203_vm1, %v2202_v8 }
 0x68a   :  { %v1479_v60 = vpop.permute.xlu1 %1478  ;;  %v1477_v61 = vpop.permute.xlu0 %1476 }
 0x68d   :  { %v2092_v52 = vpop.eup %2091 }
 0x691   :  { %v2094_v56 = vpop.eup %2093 }
 0x6c7   :  { %v1231_v53 = vpop.f32.mrb[8].mxu0 }
 0x6c8   :  { %v1312_v54 = vmul.f32 %v2092_v52, %v1231_v53  ;;  %v2002_v55 = vpop.f32.mrb[9].mxu0 }
 0x6ca   :  { %2010 = vmatprep.mubr.msk.f32.mxu0 %vm159_vm2, %v1312_v54 }
 0x6cb   :  { %v1307_v57 = vpop.f32.mrb[16].mxu1 }
 0x6cc   :  { %v1314_v58 = vmul.f32 %v2094_v56, %v1307_v57  ;;  %v2007_v59 = vpop.f32.mrb[17].mxu1 }
 0x6ce   :  { %2011 = vmatmul.mubr.msk.f32.vlgmr.msra.gmra.mrb[6].mxu0 %vm159_vm2, %v1314_v58 }
 0x6cf   :  { %2019 = vmatpush3.xpose.msk.msra.mxu0 %vm159_vm2, %v1479_v60  ;;  %2020 = vmatprep.mubr.msk.f32.mxu0 %vm2203_vm1, %v2202_v8 }
 0x6d0   :  { %2028 = vmatprep.subr.mxu0 %v2202_v8 }
 0x6d2   :  { %2021 = vmatmul.mubr.msk.f32.vlgmr.msra.gmra.mrb[10].mxu0 %vm159_vm2, %v1477_v61 }
 0x6d3   :  { %2030 = vmatprep.mubr.msk.f32.mxu0 %vm2203_vm1, %v2202_v8 }
 0x75a   :  { %v1472_v62 = vpop.f32.mrb[18].mxu1 }
 0x75b   :  { %v1554_v63 = vsel %vm2337_vm3, -2.3819763e+38, %v1472_v62  ;;  %v2017_v0 = vpop.f32.mrb[19].mxu1 }
 0x75c   :  { %v1556_v1 = vsel %vm159_vm2, %v1554_v63, -inf }
 0x75d   :  { %1557 = vmax.xlane.f32.xlu0 %v1556_v1 }
 0x773   :  { %1574 = vrot.lane.b32.xlu0 %v2303_v10, %s2214_s10 }
 0x7a5   :  { %v1550_v2 = vpop.f32.mrb[10].mxu0 }
 0x7a6   :  { %v1555_v3 = vsel %vm2337_vm3, -2.3819763e+38, %v1550_v2  ;;  %v2022_v4 = vpop.f32.mrb[11].mxu0 }
 0x7a7   :  { %v1559_v5 = vsel %vm159_vm2, %v1555_v3, -inf }
 0x7a8   :  { %1560 = vmax.xlane.f32.xlu1 %v1559_v5 }
 0x7b9   :  { %1650 = vrot.lane.b32.xlu1 %v2301_v9, %s2214_s10 }
 0x7ea   :  { %v1558_v8 = vpop.xlane.xlu0 %1557 }
 0x7eb   :  { %v1562_v6 = vsub.f32 %v1554_v63, %v1558_v8 }
 0x7ed   :  { %v1564_v7 = vmul.f32 1.442695, %v1562_v6 }
 0x7ee   :  { %v1575_v11 = vpop.permute.xlu0 %1574 }
 0x7ef   :  { %2095 = vpow2.f32 %v1564_v7  ;;  %2024 = vmatpush3.msra.mxu1 %v1575_v11 }
 0x7f9   :  { %v2096_v12 = vpop.eup %2095 }
 0x7fa   :  { %2026 = vmatmul.mubr.msk.f32.vlgmr.msra.gmra.mrb[20].mxu1 %vm159_vm2, %v2096_v12  ;;  %v1568_v10 = vsel %vm159_vm2, %v2096_v12, 0.0 }
 0x7fb   :  { %1569 = vadd.xlane.f32.xlu0 %v1568_v10 }
 0x835   :  { %v1561_v21 = vpop.xlane.xlu1 %1560 }
 0x836   :  { %v1563_v13 = vsub.f32 %v1555_v3, %v1561_v21 }
 0x838   :  { %v1566_v14 = vmul.f32 1.442695, %v1563_v13 }
 0x839   :  { %v1651_v15 = vpop.permute.xlu1 %1650 }
 0x83a   :  { %2097 = vpow2.f32 %v1566_v14  ;;  %2029 = vmatpush3.msra.mxu0 %v1651_v15 }
 0x83b   :  { %2033 = vmatprep.subr.mxu0 %v155_v17 }
 0x844   :  { %v2098_v16 = vpop.eup %2097 }
 0x845   :  { %2031 = vmatmul.mubr.msk.f32.vlgmr.msra.gmra.mrb[12].mxu0 %vm159_vm2, %v2098_v16  ;;  %v1571_v9 = vsel %vm159_vm2, %v2098_v16, 0.0 }
 0x846   :  { %1572 = vadd.xlane.f32.xlu1 %v1571_v9  ;;  %2034 = vmatpush3.msra.mxu0 %v155_v17 }
 0x888   :  { %v1570_v18 = vpop.xlane.xlu0 %1569 }
 0x889   :  { %2099 = vrcp.f32 %v1570_v18 }
 0x893   :  { %v2100_v19 = vpop.eup %2099 }
 0x8cd   :  { %v1646_v20 = vpop.f32.mrb[20].mxu1 }
 0x8ce   :  { %v1727_v22 = vmul.f32 %v2100_v19, %v1646_v20  ;;  %v2027_v23 = vpop.f32.mrb[21].mxu1 }
 0x8d0   :  { %2035 = vmatprep.mubr.msk.f32.mxu0 %vm159_vm2, %v1727_v22 }
 0x8d3   :  { %v1573_v24 = vpop.xlane.xlu1 %1572 }
 0x8d4   :  { %2101 = vrcp.f32 %v1573_v24 }
 0x8de   :  { %v2102_v25 = vpop.eup %2101 }
 0x918   :  { %v1722_v26 = vpop.f32.mrb[12].mxu0 }
 0x919   :  { %v1729_v27 = vmul.f32 %v2102_v25, %v1722_v26  ;;  %v2032_v28 = vpop.f32.mrb[13].mxu0 }
 0x91b   :  { %2036 = vmatmul.mubr.msk.f32.vlgmr.msra.gmra.mrb[6].mxu0 %vm159_vm2, %v1729_v27 }
 0x9ee   :  { %v2037_v30 = vpop.f32.mrb[6].mxu0 }
 0x9ef   :  { %v1821_v31 = vadd.f32 %v2037_v30, %v1876_v29  ;;  %v1802_v32 = vpop.f32.mrb[7].mxu0 }
 0x9f0   :  { %v1820_v33 = vadd.f32 %v1876_v29, %v1802_v32 }
 0x9f1   :  { %1823 = vst.msk [vmem:[#allocation8 + $0x8] sm:$0xff] %vm65_vm0, %v1821_v31 }
 0x9f2   :  { %1822 = vst.msk [vmem:[#allocation8] sm:$0xff] %vm65_vm0, %v1820_v33 }
 0x9f3   :  { %2180 = shalt.err (!%p2177_p0)
}
 0x9f4   :  { %s2181_s16 = scalar_lea.hbm %s2475_s4, 256 }
 0x9f5   :  { %p2182_p1 = scmp.ne.s32.totalorder %s2475_s4, %s2181_s16  ;;  %p2185_p2 = scmp.lt.u32.totalorder %s2181_s16, %s2475_s4 }
 0x9f7   :  { %p2187_p3 = pnand %p2185_p2, %p2182_p1 }
 0x9f9   :  { %2190 = shalt.err (!%p2187_p3)
}
 0x9fa   :  { %1835 = dma.vmem_to_hbm [thread:$0]  %s1830_s13, 256, %s2475_s4, [#allocation4], %s2199_s27, %s2199_s27, %s2200_s28  }
 0x9fb   :  { %2195 = dma.done.wait [#allocation4], 256  }
 0x9fc   :  { %2196 = vsyncadd [#allocation4], 4294967040 }
 0x9fd   :  { %1839 = vsyncpa [#allocation3], 1 }
 0x9fe   :  { %1840 = vsyncpa [#allocation6], 1 }
 0x9ff   :  { %1841 = vsyncpa [#allocation4], 1 }

</bundles_post_ra>
